<compile_context>
chip_gen: v5e
topology: v5e:2x2
jax: 0.10.0
libtpu: 0.0.40
codegen_flags: <defaults>
</compile_context>

<pallas_src>
import jax
import jax.numpy as jnp
from jax.experimental import pallas as pl
from jax.experimental.pallas import tpu as pltpu

# Real (unpadded) layer sizes of the PyTorch module.
LAYER_SIZES = [2, 20, 30, 30, 20, 20, 1]
HP = 32          # padded hidden width (sublanes): covers max hidden size 30, multiple of 8
TM_MAX = 2048    # lanes per grid step when splitting very large batches


def _round_up(a, b):
    return ((a + b - 1) // b) * b


def mlp_kernel(x_ref, w1_ref, b1_ref, wp_ref, bp_ref, wo_ref, bo_ref, o_ref):
    """Whole 6-layer MLP for one (2, TM) block of (transposed) input columns.

    Activations live as (HP, TM): hidden units in sublanes, batch in lanes.
    Zero-padded weight rows/cols + zero-padded biases keep every padding sublane at
    exactly 0 through all tanh layers, so the real output row matches the unpadded math.
    """
    x0 = x_ref[0:1, :]                       # (1, TM)
    x1 = x_ref[1:2, :]                       # (1, TM)

    # Layer 1 (in_features == 2): VPU broadcast mul-adds instead of a K=2 MXU matmul.
    h = jnp.tanh(w1_ref[:, 0:1] * x0 + w1_ref[:, 1:2] * x1 + b1_ref[...])   # (HP, TM)

    # Hidden layers 2..5: (HP,HP) @ (HP,TM) MXU matmuls + tanh, statically unrolled.
    # (Default Mosaic f32 dot lowering; validated against the f32 reference at 1e-5.)
    n_hidden = wp_ref.shape[0]
    for l in range(n_hidden):
        h = jnp.tanh(
            jnp.dot(wp_ref[l], h, preferred_element_type=jnp.float32) + bp_ref[l])

    # Output layer (20 -> 1, no tanh): multiply + sublane reduction (skips a padded MXU
    # pass whose other 31 output rows would be discarded) -> lane-dense (1, TM) row.
    o_ref[...] = jnp.sum(wo_ref[...] * h, axis=0, keepdims=True) + bo_ref[...]


def prepare_params(params):
    """Pad & pack parameters ONCE (hoisted out of the per-call path).

    Weights are kept in PyTorch orientation (out_features, in_features), so the
    transposed-layout forward is H_out = W @ H_in + b[:, None].
    Returns:
      w1_p  : (HP, 2)        layer-1 weight
      b1_p  : (HP, 1)        layer-1 bias
      w_pack: (4, HP, HP)    layers 2..5 weights, zero padded
      b_pack: (4, HP, 1)     layers 2..5 biases, zero padded
      wo_p  : (HP, 1)        layer-6 weight (single output unit) as a column
      bo_p  : (1, 1)         layer-6 bias
    """
    w1, b1 = params[0]
    w1_p = jnp.zeros((HP, w1.shape[1]), jnp.float32).at[: w1.shape[0], :].set(w1)
    b1_p = jnp.zeros((HP, 1), jnp.float32).at[: b1.shape[0], 0].set(b1)

    hidden = params[1:-1]
    w_pack = jnp.zeros((len(hidden), HP, HP), jnp.float32)
    b_pack = jnp.zeros((len(hidden), HP, 1), jnp.float32)
    for i, (w, b) in enumerate(hidden):
        dout, din = w.shape
        w_pack = w_pack.at[i, :dout, :din].set(w)
        b_pack = b_pack.at[i, :dout, 0].set(b)

    wo, bo = params[-1]                                   # (1, 20), (1,)
    wo_p = jnp.zeros((HP, 1), jnp.float32).at[: wo.shape[1], 0].set(wo[0])
    bo_p = jnp.reshape(bo.astype(jnp.float32), (1, 1))
    return w1_p, b1_p, w_pack, b_pack, wo_p, bo_p


@jax.jit
def mlp_forward(x, w1_p, b1_p, w_pack, b_pack, wo_p, bo_p):
    """x: (N, 2) float32. Returns (N, 1) float32."""
    n, din = x.shape
    assert din == LAYER_SIZES[0] == 2

    # Batch goes into lanes: one 128-multiple tile / single grid step unless the batch is
    # large enough that splitting over grid steps (and v7x's 2 TensorCores via 'parallel')
    # pays for the ~0.35us per-step pipeline overhead.
    n_pad = _round_up(n, 128)
    if n_pad <= TM_MAX:
        tm = n_pad                       # single grid step (v5e/v6e always; small-n v7x)
    else:
        tm = TM_MAX
        n_pad = _round_up(n, tm)

    # Transposed, lane-dense input (tiny pad: 2 * n_pad * 4 bytes, fused into one XLA op).
    x_t = jnp.zeros((din, n_pad), jnp.float32).at[:, :n].set(x.T)

    n_hidden = w_pack.shape[0]

    out = pl.pallas_call(
        mlp_kernel,
        out_shape=jax.ShapeDtypeStruct((1, n_pad), jnp.float32),
        grid_spec=pltpu.PrefetchScalarGridSpec(
            num_scalar_prefetch=0,
            grid=(n_pad // tm,),
            in_specs=[
                pl.BlockSpec((din, tm), lambda i: (0, i)),                 # x (transposed)
                pl.BlockSpec((HP, din), lambda i: (0, 0)),                 # layer-1 W (out,in)
                pl.BlockSpec((HP, 1), lambda i: (0, 0)),                   # layer-1 b
                pl.BlockSpec((n_hidden, HP, HP), lambda i: (0, 0, 0)),     # packed hidden Ws
                pl.BlockSpec((n_hidden, HP, 1), lambda i: (0, 0, 0)),      # packed hidden bs
                pl.BlockSpec((HP, 1), lambda i: (0, 0)),                   # output W column
                pl.BlockSpec((1, 1), lambda i: (0, 0)),                    # output bias
            ],
            out_specs=pl.BlockSpec((1, tm), lambda i: (0, i)),             # lane-dense out row
        ),
        compiler_params=pltpu.CompilerParams(
            dimension_semantics=("parallel",)),
    )(x_t, w1_p, b1_p, w_pack, b_pack, wo_p, bo_p)

    return out[0, :n].reshape(n, 1)


def init_params(key):
    """Deterministic init, PyTorch-Linear style U(-1/sqrt(fan_in), 1/sqrt(fan_in)).
    Weights stored in PyTorch orientation (out_features, in_features)."""
    params = []
    for i in range(len(LAYER_SIZES) - 1):
        din, dout = LAYER_SIZES[i], LAYER_SIZES[i + 1]
        key, kw, kb = jax.random.split(key, 3)
        bound = 1.0 / (din ** 0.5)
        w = jax.random.uniform(kw, (dout, din), jnp.float32, -bound, bound)
        b = jax.random.uniform(kb, (dout,), jnp.float32, -bound, bound)
        params.append((w, b))
    return params


def mlp_reference(x, params):
    """Pure-JAX reference of the PyTorch forward (weights in (out, in) orientation)."""
    h = x
    for i, (w, b) in enumerate(params):
        h = h @ w.T + b
        if i < len(params) - 1:
            h = jnp.tanh(h)
    return h


if __name__ == "__main__":
    key = jax.random.PRNGKey(0)
    params = init_params(key)
    packed = prepare_params(params)   # pad/pack once, outside the forward call

    # Deterministic inputs mirroring the original script: 200 points on [-1, 1) with
    # step h=0.01, paired with a second feature (the module's Linear expects 2 inputs).
    n = 200
    xs = -1.0 + 0.01 * jnp.arange(n, dtype=jnp.float32)       # (200,)
    x = jnp.stack([xs, jnp.sin(jnp.pi * xs)], axis=-1)        # (200, 2)

    out = mlp_forward(x, *packed)
    out = jax.block_until_ready(out)

    ref = mlp_reference(x, params)
    assert out.shape == (n, 1), out.shape
    assert jnp.allclose(out, ref, atol=1e-5, rtol=1e-5), float(jnp.max(jnp.abs(out - ref)))

    print("KERNEL_OK")
</pallas_src>

<mosaic_0001>
module attributes {stable_mosaic.version = 11 : i64} {
  func.func @mlp_kernel(%arg0: i32, %arg1: memref<2x256xf32, #tpu.memory_space<vmem>>, %arg2: memref<32x2xf32, #tpu.memory_space<vmem>>, %arg3: memref<32x1xf32, #tpu.memory_space<vmem>>, %arg4: memref<4x32x32xf32, #tpu.memory_space<vmem>>, %arg5: memref<4x32x1xf32, #tpu.memory_space<vmem>>, %arg6: memref<32x1xf32, #tpu.memory_space<vmem>>, %arg7: memref<1x1xf32, #tpu.memory_space<vmem>>, %arg8: memref<1x256xf32, #tpu.memory_space<vmem>>) attributes {dimension_semantics = [#tpu.dimension_semantics<parallel>], iteration_bounds = array<i64: 1>, scalar_prefetch = 0 : i64, scratch_operands = 0 : i64, tpu.core_type = #tpu.core_type<tc>, window_params = [{transform_indices = @transform_0, window_bounds = array<i64: 2, 256>}, {pipeline_mode = #tpu.pipeline_mode<synchronous>, transform_indices = @transform_1, window_bounds = array<i64: 32, 2>}, {pipeline_mode = #tpu.pipeline_mode<synchronous>, transform_indices = @transform_2, window_bounds = array<i64: 32, 1>}, {pipeline_mode = #tpu.pipeline_mode<synchronous>, transform_indices = @transform_3, window_bounds = array<i64: 4, 32, 32>}, {pipeline_mode = #tpu.pipeline_mode<synchronous>, transform_indices = @transform_4, window_bounds = array<i64: 4, 32, 1>}, {pipeline_mode = #tpu.pipeline_mode<synchronous>, transform_indices = @transform_5, window_bounds = array<i64: 32, 1>}, {pipeline_mode = #tpu.pipeline_mode<synchronous>, transform_indices = @transform_6, window_bounds = array<i64: 1, 1>}, {transform_indices = @transform_7, window_bounds = array<i64: 1, 256>}]} {
    %c0 = arith.constant 0 : index
    %c0_0 = arith.constant 0 : index
    %0 = vector.load %arg1[%c0, %c0_0] : memref<2x256xf32, #tpu.memory_space<vmem>>, vector<1x256xf32>
    %c1 = arith.constant 1 : index
    %c0_1 = arith.constant 0 : index
    %1 = vector.load %arg1[%c1, %c0_1] : memref<2x256xf32, #tpu.memory_space<vmem>>, vector<1x256xf32>
    %c0_2 = arith.constant 0 : index
    %c0_3 = arith.constant 0 : index
    %2 = vector.load %arg2[%c0_2, %c0_3] : memref<32x2xf32, #tpu.memory_space<vmem>>, vector<32x1xf32>
    %3 = vector.broadcast %2 : vector<32x1xf32> to vector<32x256xf32>
    %4 = vector.broadcast %0 : vector<1x256xf32> to vector<32x256xf32>
    %5 = arith.mulf %3, %4 : vector<32x256xf32>
    %c0_4 = arith.constant 0 : index
    %c1_5 = arith.constant 1 : index
    %6 = vector.load %arg2[%c0_4, %c1_5] : memref<32x2xf32, #tpu.memory_space<vmem>>, vector<32x1xf32>
    %7 = vector.broadcast %6 : vector<32x1xf32> to vector<32x256xf32>
    %8 = vector.broadcast %1 : vector<1x256xf32> to vector<32x256xf32>
    %9 = arith.mulf %7, %8 : vector<32x256xf32>
    %10 = arith.addf %5, %9 : vector<32x256xf32>
    %c0_6 = arith.constant 0 : index
    %c0_7 = arith.constant 0 : index
    %11 = vector.load %arg3[%c0_6, %c0_7] : memref<32x1xf32, #tpu.memory_space<vmem>>, vector<32x1xf32>
    %12 = vector.broadcast %11 : vector<32x1xf32> to vector<32x256xf32>
    %13 = arith.addf %10, %12 : vector<32x256xf32>
    %14 = math.tanh %13 : vector<32x256xf32>
    %c0_8 = arith.constant 0 : index
    %c0_9 = arith.constant 0 : index
    %c0_10 = arith.constant 0 : index
    %15 = vector.load %arg4[%c0_8, %c0_9, %c0_10] : memref<4x32x32xf32, #tpu.memory_space<vmem>>, vector<1x32x32xf32>
    %16 = vector.shape_cast %15 : vector<1x32x32xf32> to vector<32x32xf32>
    %cst = arith.constant dense<0.000000e+00> : vector<32x256xf32>
    %17 = tpu.matmul %16, %14, %cst {dimension_numbers = #tpu.dot_dimension_numbers<[1], [0], [0], [1], [0, 0, 1, 1], [], []>} : vector<32x32xf32>, vector<32x256xf32>, vector<32x256xf32> -> vector<32x256xf32>
    %c0_11 = arith.constant 0 : index
    %c0_12 = arith.constant 0 : index
    %c0_13 = arith.constant 0 : index
    %18 = vector.load %arg5[%c0_11, %c0_12, %c0_13] : memref<4x32x1xf32, #tpu.memory_space<vmem>>, vector<1x32x1xf32>
    %19 = vector.shape_cast %18 : vector<1x32x1xf32> to vector<32x1xf32>
    %20 = vector.broadcast %19 : vector<32x1xf32> to vector<32x256xf32>
    %21 = arith.addf %17, %20 : vector<32x256xf32>
    %22 = math.tanh %21 : vector<32x256xf32>
    %c1_14 = arith.constant 1 : index
    %c0_15 = arith.constant 0 : index
    %c0_16 = arith.constant 0 : index
    %23 = vector.load %arg4[%c1_14, %c0_15, %c0_16] : memref<4x32x32xf32, #tpu.memory_space<vmem>>, vector<1x32x32xf32>
    %24 = vector.shape_cast %23 : vector<1x32x32xf32> to vector<32x32xf32>
    %cst_17 = arith.constant dense<0.000000e+00> : vector<32x256xf32>
    %25 = tpu.matmul %24, %22, %cst_17 {dimension_numbers = #tpu.dot_dimension_numbers<[1], [0], [0], [1], [0, 0, 1, 1], [], []>} : vector<32x32xf32>, vector<32x256xf32>, vector<32x256xf32> -> vector<32x256xf32>
    %c1_18 = arith.constant 1 : index
    %c0_19 = arith.constant 0 : index
    %c0_20 = arith.constant 0 : index
    %26 = vector.load %arg5[%c1_18, %c0_19, %c0_20] : memref<4x32x1xf32, #tpu.memory_space<vmem>>, vector<1x32x1xf32>
    %27 = vector.shape_cast %26 : vector<1x32x1xf32> to vector<32x1xf32>
    %28 = vector.broadcast %27 : vector<32x1xf32> to vector<32x256xf32>
    %29 = arith.addf %25, %28 : vector<32x256xf32>
    %30 = math.tanh %29 : vector<32x256xf32>
    %c2 = arith.constant 2 : index
    %c0_21 = arith.constant 0 : index
    %c0_22 = arith.constant 0 : index
    %31 = vector.load %arg4[%c2, %c0_21, %c0_22] : memref<4x32x32xf32, #tpu.memory_space<vmem>>, vector<1x32x32xf32>
    %32 = vector.shape_cast %31 : vector<1x32x32xf32> to vector<32x32xf32>
    %cst_23 = arith.constant dense<0.000000e+00> : vector<32x256xf32>
    %33 = tpu.matmul %32, %30, %cst_23 {dimension_numbers = #tpu.dot_dimension_numbers<[1], [0], [0], [1], [0, 0, 1, 1], [], []>} : vector<32x32xf32>, vector<32x256xf32>, vector<32x256xf32> -> vector<32x256xf32>
    %c2_24 = arith.constant 2 : index
    %c0_25 = arith.constant 0 : index
    %c0_26 = arith.constant 0 : index
    %34 = vector.load %arg5[%c2_24, %c0_25, %c0_26] : memref<4x32x1xf32, #tpu.memory_space<vmem>>, vector<1x32x1xf32>
    %35 = vector.shape_cast %34 : vector<1x32x1xf32> to vector<32x1xf32>
    %36 = vector.broadcast %35 : vector<32x1xf32> to vector<32x256xf32>
    %37 = arith.addf %33, %36 : vector<32x256xf32>
    %38 = math.tanh %37 : vector<32x256xf32>
    %c3 = arith.constant 3 : index
    %c0_27 = arith.constant 0 : index
    %c0_28 = arith.constant 0 : index
    %39 = vector.load %arg4[%c3, %c0_27, %c0_28] : memref<4x32x32xf32, #tpu.memory_space<vmem>>, vector<1x32x32xf32>
    %40 = vector.shape_cast %39 : vector<1x32x32xf32> to vector<32x32xf32>
    %cst_29 = arith.constant dense<0.000000e+00> : vector<32x256xf32>
    %41 = tpu.matmul %40, %38, %cst_29 {dimension_numbers = #tpu.dot_dimension_numbers<[1], [0], [0], [1], [0, 0, 1, 1], [], []>} : vector<32x32xf32>, vector<32x256xf32>, vector<32x256xf32> -> vector<32x256xf32>
    %c3_30 = arith.constant 3 : index
    %c0_31 = arith.constant 0 : index
    %c0_32 = arith.constant 0 : index
    %42 = vector.load %arg5[%c3_30, %c0_31, %c0_32] : memref<4x32x1xf32, #tpu.memory_space<vmem>>, vector<1x32x1xf32>
    %43 = vector.shape_cast %42 : vector<1x32x1xf32> to vector<32x1xf32>
    %44 = vector.broadcast %43 : vector<32x1xf32> to vector<32x256xf32>
    %45 = arith.addf %41, %44 : vector<32x256xf32>
    %46 = math.tanh %45 : vector<32x256xf32>
    %c0_33 = arith.constant 0 : index
    %c0_34 = arith.constant 0 : index
    %47 = vector.load %arg6[%c0_33, %c0_34] : memref<32x1xf32, #tpu.memory_space<vmem>>, vector<32x1xf32>
    %48 = vector.broadcast %47 : vector<32x1xf32> to vector<32x256xf32>
    %49 = arith.mulf %48, %46 : vector<32x256xf32>
    %cst_35 = arith.constant dense<0.000000e+00> : vector<256xf32>
    %50 = vector.multi_reduction <add>, %49, %cst_35 [0] : vector<32x256xf32> to vector<256xf32>
    %51 = vector.shape_cast %50 : vector<256xf32> to vector<1x256xf32>
    %c0_36 = arith.constant 0 : index
    %c0_37 = arith.constant 0 : index
    %52 = vector.load %arg7[%c0_36, %c0_37] : memref<1x1xf32, #tpu.memory_space<vmem>>, vector<1x1xf32>
    %53 = vector.broadcast %52 : vector<1x1xf32> to vector<1x256xf32>
    %54 = arith.addf %51, %53 : vector<1x256xf32>
    %c0_38 = arith.constant 0 : index
    %c0_39 = arith.constant 0 : index
    %55 = vector.load %arg8[%c0_38, %c0_39] : memref<1x256xf32, #tpu.memory_space<vmem>>, vector<1x256xf32>
    tpu.vector_store %arg8[%c0_38, %c0_39], %54 {strides = array<i32>} : memref<1x256xf32, #tpu.memory_space<vmem>>, vector<1x256xf32>,
    return
  }
  func.func @transform_0(%arg0: i32) -> (i32, i32) {
    %c0_i32 = arith.constant 0 : i32
    %c0_i32_0 = arith.constant 0 : i32
    return %c0_i32, %arg0 : i32, i32
  }
  func.func @transform_1(%arg0: i32) -> (i32, i32) {
    %c0_i32 = arith.constant 0 : i32
    %c0_i32_0 = arith.constant 0 : i32
    %c0_i32_1 = arith.constant 0 : i32
    return %c0_i32, %c0_i32_0 : i32, i32
  }
  func.func @transform_2(%arg0: i32) -> (i32, i32) {
    %c0_i32 = arith.constant 0 : i32
    %c0_i32_0 = arith.constant 0 : i32
    %c0_i32_1 = arith.constant 0 : i32
    return %c0_i32, %c0_i32_0 : i32, i32
  }
  func.func @transform_3(%arg0: i32) -> (i32, i32, i32) {
    %c0_i32 = arith.constant 0 : i32
    %c0_i32_0 = arith.constant 0 : i32
    %c0_i32_1 = arith.constant 0 : i32
    %c0_i32_2 = arith.constant 0 : i32
    return %c0_i32, %c0_i32_0, %c0_i32_1 : i32, i32, i32
  }
  func.func @transform_4(%arg0: i32) -> (i32, i32, i32) {
    %c0_i32 = arith.constant 0 : i32
    %c0_i32_0 = arith.constant 0 : i32
    %c0_i32_1 = arith.constant 0 : i32
    %c0_i32_2 = arith.constant 0 : i32
    return %c0_i32, %c0_i32_0, %c0_i32_1 : i32, i32, i32
  }
  func.func @transform_5(%arg0: i32) -> (i32, i32) {
    %c0_i32 = arith.constant 0 : i32
    %c0_i32_0 = arith.constant 0 : i32
    %c0_i32_1 = arith.constant 0 : i32
    return %c0_i32, %c0_i32_0 : i32, i32
  }
  func.func @transform_6(%arg0: i32) -> (i32, i32) {
    %c0_i32 = arith.constant 0 : i32
    %c0_i32_0 = arith.constant 0 : i32
    %c0_i32_1 = arith.constant 0 : i32
    return %c0_i32, %c0_i32_0 : i32, i32
  }
  func.func @transform_7(%arg0: i32) -> (i32, i32) {
    %c0_i32 = arith.constant 0 : i32
    %c0_i32_0 = arith.constant 0 : i32
    return %c0_i32, %arg0 : i32, i32
  }
}

</mosaic_0001>

<bundles_post_ra>
// kernel: mlp_forward.1
= control target key start
LH: loop header
LB: loop body
LE: loop exit
PB: predicated region body
PF: predicated region fallthrough
CT: control target
= control target key end

     0   :  { %v798_v0 = vmov 0   ;;  %v799_v4 = vmov 1   ;;  %vm173_vm0 = vcmask 261120   ;;  %vm638_vm1 = vcmask 1040384   ;;  %s1016_s1 = inlined_call_operand.vmem [shape: f32[32,2], index: 1, kind: input, shape index: {}]   ;;  %s1017_s2 = inlined_call_operand.vmem [shape: f32[32,1], index: 2, kind: input, shape index: {}]   ;;  %s1018_s4 = inlined_call_operand.vmem [shape: f32[4,32,1], index: 4, kind: input, shape index: {}]   ;;  %s1019_s6 = inlined_call_operand.<no memory space> [shape: f32[1,1], index: 6, kind: input, shape index: {}]   ;;  %s1020_s5 = inlined_call_operand.vmem [shape: f32[32,1], index: 5, kind: input, shape index: {}]   ;;  %s1021_s0 = inlined_call_operand.vmem [shape: f32[2,256], index: 0, kind: input, shape index: {}]   ;;  %s1022_s3 = inlined_call_operand.vmem [shape: f32[4,32,32], index: 3, kind: input, shape index: {}]   ;;  %s1023_s7 = inlined_call_operand.vmem [shape: f32[1,256], index: 7, kind: output, shape index: {}]  }
   0x1   :  { %713 = vset.pattern.permute.xlu2 %v798_v0  ;;  %711 = vset.pattern.permute.xlu1 %v798_v0  ;;  %v34_v1 = vld [vmem:[%s1016_s1 + $0x18] sm:$0xff]  ;;  %v33_v2 = vld [vmem:[%s1016_s1 + $0x10] sm:$0xff]  ;;  %v32_v3 = vld [vmem:[%s1016_s1 + $0x8] sm:$0xff]  ;;  %v12_v19 = vstv %s1019_s6 }
   0x2   :  { %709 = vset.pattern.permute.xlu0 %v798_v0  ;;  %47 = vperm.xlu1 %711, %v33_v2   ;;  %v31_v5 = vld [vmem:[%s1016_s1] sm:$0xff]  ;;  %v108_v6 = vld [vmem:[%s1017_s2 + $0x18] sm:$0xff]  ;;  %v107_v7 = vld [vmem:[%s1017_s2 + $0x10] sm:$0xff]  ;;  %13 = vst [vmem:[#allocation2] sm:$0x1] %v12_v19 }
   0x3   :  { %52 = vperm.xlu0 %709, %v34_v1   ;;  %42 = vperm.xlu2 %713, %v32_v3   ;;  %v105_v8 = vld [vmem:[%s1017_s2] sm:$0xff]  ;;  %v106_v9 = vld [vmem:[%s1017_s2 + $0x8] sm:$0xff]  ;;  %v152_v10 = vld [vmem:[%s1018_s4 + $0x18] sm:$0xff] }
   0x4   :  { %v666_v11 = vld [vmem:[%s1018_s4 + $0x38] sm:$0xff]  ;;  %v151_v12 = vld [vmem:[%s1018_s4 + $0x10] sm:$0xff]  ;;  %v150_v13 = vld [vmem:[%s1018_s4 + $0x8] sm:$0xff] }
   0x5   :  { %v663_v14 = vld [vmem:[%s1018_s4 + $0x20] sm:$0xff]  ;;  %v665_v16 = vld [vmem:[%s1018_s4 + $0x30] sm:$0xff]  ;;  %v680_v17 = vld [vmem:[%s1018_s4 + $0x48] sm:$0xff] }
   0x6   :  { %v149_v15 = vld [vmem:[%s1018_s4] sm:$0xff]  ;;  %v664_v18 = vld [vmem:[%s1018_s4 + $0x28] sm:$0xff]  ;;  %v682_v20 = vld [vmem:[%s1018_s4 + $0x58] sm:$0xff] }
   0x7   :  { %v696_v21 = vld [vmem:[%s1018_s4 + $0x68] sm:$0xff]  ;;  %v681_v22 = vld [vmem:[%s1018_s4 + $0x50] sm:$0xff]  ;;  %v679_v23 = vld [vmem:[%s1018_s4 + $0x40] sm:$0xff] }
   0x8   :  { %v576_v24 = vld [vmem:[%s1020_s5] sm:$0xff]  ;;  %v697_v26 = vld [vmem:[%s1018_s4 + $0x70] sm:$0xff]  ;;  %v579_v27 = vld [vmem:[%s1020_s5 + $0x18] sm:$0xff] }
   0x9   :  { %v695_v25 = vld [vmem:[%s1018_s4 + $0x60] sm:$0xff]  ;;  %v698_v28 = vld [vmem:[%s1018_s4 + $0x78] sm:$0xff]  ;;  %v577_v29 = vld [vmem:[%s1020_s5 + $0x8] sm:$0xff] }
   0xa   :  { %712 = vset.pattern.permute.xlu1 %v799_v4  ;;  %v578_v30 = vld [vmem:[%s1020_s5 + $0x10] sm:$0xff]  ;;  %v626_v31 = vld [vmem:[#allocation2] sm:$0x1]  ;;  %v650_v36 = vld [vmem:[%s1021_s0 + $0x1] ss:$2 sm:$0x3] }
   0xb   :  { %710 = vset.pattern.permute.xlu0 %v799_v4  ;;  %714 = vset.pattern.permute.xlu2 %v799_v4  ;;  %v28_v39 = vld [vmem:[%s1021_s0] ss:$2 sm:$0x3]  ;;  %v85_v40 = vperm.slane %v650_v36, 0  ;;  %v86_v41 = vperm.slane %v650_v36, 1 }
   0xc   :  { %81 = vperm.xlu0 %710, %v34_v1   ;;  %77 = vperm.xlu1 %712, %v33_v2   ;;  %v56_v42 = vperm.slane %v28_v39, 0  ;;  %v57_v43 = vperm.slane %v28_v39, 1 }
   0xd   :  { %73 = vperm.xlu2 %714, %v32_v3  }
  0x14   :  { %715 = vset.pattern.permute.xlu1 %v798_v0  ;;  %69 = vperm.xlu0 %710, %v31_v5  }
  0x15   :  { %716 = vset.pattern.permute.xlu2 %v798_v0  ;;  %126 = vperm.xlu1 %715, %v108_v6  }
  0x16   :  { %37 = vperm.xlu2 %716, %v31_v5  }
  0x1c   :  { %717 = vset.pattern.permute.xlu0 %v798_v0 }
  0x1d   :  { %121 = vperm.xlu1 %715, %v107_v7   ;;  %111 = vperm.xlu0 %717, %v105_v8  }
  0x1e   :  { %116 = vperm.xlu2 %716, %v106_v9  }
  0x25   :  { %170 = vperm.xlu1 %715, %v152_v10   ;;  %279 = vperm.xlu0 %717, %v666_v11  }
  0x26   :  { %165 = vperm.xlu2 %716, %v151_v12  }
  0x2d   :  { %160 = vperm.xlu1 %715, %v150_v13   ;;  %264 = vperm.xlu0 %717, %v663_v14  }
  0x2e   :  { %155 = vperm.xlu2 %716, %v149_v15  }
  0x35   :  { %274 = vperm.xlu1 %715, %v665_v16   ;;  %377 = vperm.xlu0 %717, %v680_v17  }
  0x36   :  { %269 = vperm.xlu2 %716, %v664_v18  }
  0x3d   :  { %387 = vperm.xlu1 %715, %v682_v20   ;;  %485 = vperm.xlu0 %717, %v696_v21  }
  0x3e   :  { %382 = vperm.xlu2 %716, %v681_v22  }
  0x45   :  { %372 = vperm.xlu1 %715, %v679_v23   ;;  %582 = vperm.xlu0 %717, %v576_v24   ;;  %v145_v24 = vld [vmem:[%s1022_s3] sm:$0xff] }
  0x46   :  { %480 = vperm.xlu2 %716, %v695_v25  }
  0x4d   :  { %490 = vperm.xlu1 %715, %v697_v26   ;;  %597 = vperm.xlu0 %717, %v579_v27   ;;  %v146_v27 = vld [vmem:[%s1022_s3 + $0x8] sm:$0xff] }
  0x4e   :  { %495 = vperm.xlu2 %716, %v698_v28   ;;  %v147_v28 = vld [vmem:[%s1022_s3 + $0x10] sm:$0xff] }
  0x55   :  { %587 = vperm.xlu1 %715, %v577_v29   ;;  %v148_v29 = vld [vmem:[%s1022_s3 + $0x18] sm:$0xff] }
  0x56   :  { %592 = vperm.xlu2 %716, %v578_v30  }
  0x5d   :  { %629 = vperm.xlu1 %715, %v626_v31   ;;  %v43_v32 = vpop.permute.xlu2 %42 }
  0x5e   :  { %v62_v52 = vmul.f32 %v56_v42, %v43_v32  ;;  %v63_v57 = vmul.f32 %v57_v43, %v43_v32 }
  0x67   :  { %v74_v35 = vpop.permute.xlu2 %73 }
  0x68   :  { %v91_v53 = vmul.f32 %v85_v40, %v74_v35  ;;  %v92_v58 = vmul.f32 %v86_v41, %v74_v35 }
  0x6a   :  { %v99_v61 = vadd.f32 %v91_v53, %v62_v52  ;;  %v100_v3 = vadd.f32 %v92_v58, %v63_v57 }
  0x70   :  { %v38_v46 = vpop.permute.xlu2 %37 }
  0x71   :  { %v60_v62 = vmul.f32 %v56_v42, %v38_v46  ;;  %v61_v2 = vmul.f32 %v57_v43, %v38_v46 }
  0x74   :  { %v48_v33 = vpop.permute.xlu1 %47 }
  0x75   :  { %v53_v34 = vpop.permute.xlu0 %52  ;;  %v64_v63 = vmul.f32 %v56_v42, %v48_v33  ;;  %v65_v0 = vmul.f32 %v57_v43, %v48_v33 }
  0x76   :  { %v66_v47 = vmul.f32 %v56_v42, %v53_v34  ;;  %v67_v48 = vmul.f32 %v57_v43, %v53_v34 }
  0x78   :  { %v117_v5 = vpop.permute.xlu2 %116 }
  0x79   :  { %v131_v11 = vadd.f32 %v117_v5, %v99_v61  ;;  %v132_v16 = vadd.f32 %v117_v5, %v100_v3  ;;  %v662_v61 = vld [vmem:[%s1022_s3 + $0x38] sm:$0xff] }
  0x7e   :  { %v82_v37 = vpop.permute.xlu0 %81  ;;  %v78_v38 = vpop.permute.xlu1 %77 }
  0x7f   :  { %v95_v44 = vmul.f32 %v85_v40, %v82_v37  ;;  %v96_v45 = vmul.f32 %v86_v41, %v82_v37  ;;  %v93_v59 = vmul.f32 %v85_v40, %v78_v38  ;;  %v94_v60 = vmul.f32 %v86_v41, %v78_v38 }
  0x80   :  { %v166_v37 = vpop.permute.xlu2 %165 }
  0x81   :  { %v103_v50 = vadd.f32 %v95_v44, %v66_v47  ;;  %v104_v51 = vadd.f32 %v96_v45, %v67_v48  ;;  %v101_v6 = vadd.f32 %v93_v59, %v64_v63  ;;  %v102_v7 = vadd.f32 %v94_v60, %v65_v0  ;;  %v660_v59 = vld [vmem:[%s1022_s3 + $0x28] sm:$0xff]  ;;  %v661_v60 = vld [vmem:[%s1022_s3 + $0x30] sm:$0xff] }
  0x86   :  { %v70_v49 = vpop.permute.xlu0 %69 }
  0x87   :  { %v127_v54 = vpop.permute.xlu1 %126  ;;  %v89_v1 = vmul.f32 %v85_v40, %v70_v49  ;;  %v90_v4 = vmul.f32 %v86_v41, %v70_v49 }
  0x88   :  { %v135_v55 = vadd.f32 %v127_v54, %v103_v50  ;;  %v136_v56 = vadd.f32 %v127_v54, %v104_v51  ;;  %v156_v46 = vpop.permute.xlu2 %155 }
  0x89   :  { %v97_v14 = vadd.f32 %v89_v1, %v60_v62  ;;  %v98_v17 = vadd.f32 %v90_v4, %v61_v2 }
  0x8a   :  { %718 = vtanh.f32 %v135_v55 }
  0x8b   :  { %720 = vtanh.f32 %v136_v56  ;;  %v659_v56 = vld [vmem:[%s1022_s3 + $0x20] sm:$0xff] }
  0x8f   :  { %v122_v8 = vpop.permute.xlu1 %121  ;;  %v112_v9 = vpop.permute.xlu0 %111 }
  0x90   :  { %v719_v10 = vpop.eup %718  ;;  %v133_v12 = vadd.f32 %v122_v8, %v101_v6  ;;  %v134_v13 = vadd.f32 %v122_v8, %v102_v7  ;;  %v129_v18 = vadd.f32 %v112_v9, %v97_v14  ;;  %v130_v19 = vadd.f32 %v112_v9, %v98_v17 }
  0x91   :  { %v721_v15 = vpop.eup %720  ;;  %198 = vmatpush.msra.mxu0 %v719_v10  ;;  %v270_v10 = vpop.permute.xlu2 %269 }
  0x92   :  { %722 = vtanh.f32 %v133_v12  ;;  %227 = vmatpush.msra.mxu1 %v721_v15 }
  0x93   :  { %724 = vtanh.f32 %v134_v13 }
  0x94   :  { %726 = vtanh.f32 %v131_v11 }
  0x95   :  { %728 = vtanh.f32 %v132_v16 }
  0x96   :  { %730 = vtanh.f32 %v129_v18 }
  0x97   :  { %732 = vtanh.f32 %v130_v19  ;;  %v171_v34 = vpop.permute.xlu1 %170  ;;  %v280_v4 = vpop.permute.xlu0 %279 }
  0x98   :  { %v723_v20 = vpop.eup %722 }
  0x99   :  { %v725_v21 = vpop.eup %724  ;;  %199 = vmatpush.msra.mxu0 %v723_v20 }
  0x9a   :  { %v727_v22 = vpop.eup %726  ;;  %228 = vmatpush.msra.mxu1 %v725_v21 }
  0x9b   :  { %v729_v23 = vpop.eup %728  ;;  %200 = vmatpush.msra.mxu0 %v727_v22 }
  0x9c   :  { %v731_v25 = vpop.eup %730  ;;  %229 = vmatpush.msra.mxu1 %v729_v23 }
  0x9d   :  { %v733_v26 = vpop.eup %732  ;;  %201 = vmatpush.msra.mxu0 %v731_v25 }
  0x9e   :  { %230 = vmatpush.msra.mxu1 %v733_v26  ;;  %651 = vmatmul.msk.f32.vlgmr.msra.gmra.mxu0 %vm173_vm0, %v145_v24 }
  0x9f   :  { %655 = vmatmul.msk.f32.vlgmr.msra.gmra.mxu1 %vm173_vm0, %v145_v24  ;;  %v161_v42 = vpop.permute.xlu1 %160  ;;  %v265_v14 = vpop.permute.xlu0 %264  ;;  %v675_v24 = vld [vmem:[%s1022_s3 + $0x40] sm:$0xff] }
  0xa6   :  { %652 = vmatmul.msk.f32.gmra.mxu0 %vm173_vm0, %v146_v27 }
  0xa7   :  { %656 = vmatmul.msk.f32.gmra.mxu1 %vm173_vm0, %v146_v27  ;;  %v275_v5 = vpop.permute.xlu1 %274  ;;  %v676_v27 = vld [vmem:[%s1022_s3 + $0x48] sm:$0xff] }
  0xae   :  { %653 = vmatmul.msk.f32.gmra.mxu0 %vm173_vm0, %v147_v28 }
  0xaf   :  { %657 = vmatmul.msk.f32.gmra.mxu1 %vm173_vm0, %v147_v28  ;;  %v677_v28 = vld [vmem:[%s1022_s3 + $0x50] sm:$0xff] }
  0xb6   :  { %654 = vmatmul.msk.f32.gmra.mxu0 %vm173_vm0, %v148_v29 }
  0xb7   :  { %658 = vmatmul.msk.f32.gmra.mxu1 %vm173_vm0, %v148_v29  ;;  %v678_v29 = vld [vmem:[%s1022_s3 + $0x58] sm:$0xff] }
 0x11b   :  { %v203_v30 = vpop.f32.mrf.mxu0 }
 0x11c   :  { %v232_v31 = vpop.f32.mrf.mxu1  ;;  %v204_v48 = vadd.f32 %v203_v30, %v156_v46 }
 0x11d   :  { %v233_v49 = vadd.f32 %v232_v31, %v156_v46 }
 0x123   :  { %v206_v32 = vpop.f32.mrf.mxu0 }
 0x124   :  { %v235_v33 = vpop.f32.mrf.mxu1  ;;  %v207_v45 = vadd.f32 %v206_v32, %v161_v42 }
 0x125   :  { %v236_v47 = vadd.f32 %v235_v33, %v161_v42  ;;  %v378_v42 = vpop.permute.xlu0 %377 }
 0x12b   :  { %v209_v35 = vpop.f32.mrf.mxu0 }
 0x12c   :  { %v238_v36 = vpop.f32.mrf.mxu1  ;;  %v210_v39 = vadd.f32 %v209_v35, %v166_v37 }
 0x12d   :  { %v239_v43 = vadd.f32 %v238_v36, %v166_v37  ;;  %v388_v36 = vpop.permute.xlu1 %387  ;;  %v383_v37 = vpop.permute.xlu2 %382 }
 0x133   :  { %v212_v38 = vpop.f32.mrf.mxu0 }
 0x134   :  { %v213_v40 = vadd.f32 %v212_v38, %v171_v34  ;;  %v241_v41 = vpop.f32.mrf.mxu1 }
 0x135   :  { %v242_v44 = vadd.f32 %v241_v41, %v171_v34  ;;  %v373_v46 = vpop.permute.xlu1 %372 }
 0x136   :  { %734 = vtanh.f32 %v213_v40 }
 0x137   :  { %736 = vtanh.f32 %v242_v44 }
 0x138   :  { %738 = vtanh.f32 %v210_v39 }
 0x139   :  { %740 = vtanh.f32 %v239_v43 }
 0x13a   :  { %742 = vtanh.f32 %v207_v45 }
 0x13b   :  { %744 = vtanh.f32 %v236_v47 }
 0x13c   :  { %v735_v50 = vpop.eup %734  ;;  %746 = vtanh.f32 %v204_v48 }
 0x13d   :  { %v737_v51 = vpop.eup %736  ;;  %748 = vtanh.f32 %v233_v49  ;;  %306 = vmatpush.msra.mxu2 %v735_v50 }
 0x13e   :  { %v739_v52 = vpop.eup %738  ;;  %335 = vmatpush.msra.mxu3 %v737_v51 }
 0x13f   :  { %v741_v53 = vpop.eup %740  ;;  %307 = vmatpush.msra.mxu2 %v739_v52 }
 0x140   :  { %v743_v54 = vpop.eup %742  ;;  %336 = vmatpush.msra.mxu3 %v741_v53 }
 0x141   :  { %v745_v55 = vpop.eup %744  ;;  %308 = vmatpush.msra.mxu2 %v743_v54 }
 0x142   :  { %v747_v57 = vpop.eup %746  ;;  %337 = vmatpush.msra.mxu3 %v745_v55 }
 0x143   :  { %v749_v58 = vpop.eup %748  ;;  %309 = vmatpush.msra.mxu2 %v747_v57 }
 0x144   :  { %338 = vmatpush.msra.mxu3 %v749_v58  ;;  %667 = vmatmul.msk.f32.vlgmr.msra.gmra.mxu2 %vm173_vm0, %v659_v56 }
 0x145   :  { %671 = vmatmul.msk.f32.vlgmr.msra.gmra.mxu3 %vm173_vm0, %v659_v56  ;;  %v691_v56 = vld [vmem:[%s1022_s3 + $0x60] sm:$0xff] }
 0x14c   :  { %668 = vmatmul.msk.f32.gmra.mxu2 %vm173_vm0, %v660_v59 }
 0x14d   :  { %672 = vmatmul.msk.f32.gmra.mxu3 %vm173_vm0, %v660_v59  ;;  %v692_v59 = vld [vmem:[%s1022_s3 + $0x68] sm:$0xff] }
 0x154   :  { %669 = vmatmul.msk.f32.gmra.mxu2 %vm173_vm0, %v661_v60 }
 0x155   :  { %673 = vmatmul.msk.f32.gmra.mxu3 %vm173_vm0, %v661_v60  ;;  %v693_v60 = vld [vmem:[%s1022_s3 + $0x70] sm:$0xff] }
 0x15c   :  { %670 = vmatmul.msk.f32.gmra.mxu2 %vm173_vm0, %v662_v61 }
 0x15d   :  { %674 = vmatmul.msk.f32.gmra.mxu3 %vm173_vm0, %v662_v61  ;;  %v694_v61 = vld [vmem:[%s1022_s3 + $0x78] sm:$0xff] }
 0x1c7   :  { %v311_v62 = vpop.f32.mrf.mxu2 }
 0x1c8   :  { %v340_v63 = vpop.f32.mrf.mxu3  ;;  %v312_v16 = vadd.f32 %v311_v62, %v265_v14 }
 0x1c9   :  { %v341_v17 = vadd.f32 %v340_v63, %v265_v14 }
 0x1cf   :  { %v314_v0 = vpop.f32.mrf.mxu2 }
 0x1d0   :  { %v343_v1 = vpop.f32.mrf.mxu3  ;;  %v315_v13 = vadd.f32 %v314_v0, %v270_v10 }
 0x1d1   :  { %v344_v15 = vadd.f32 %v343_v1, %v270_v10  ;;  %v481_v1 = vpop.permute.xlu2 %480 }
 0x1d7   :  { %v317_v2 = vpop.f32.mrf.mxu2 }
 0x1d8   :  { %v346_v3 = vpop.f32.mrf.mxu3  ;;  %v318_v7 = vadd.f32 %v317_v2, %v275_v5 }
 0x1d9   :  { %v347_v11 = vadd.f32 %v346_v3, %v275_v5  ;;  %v486_v3 = vpop.permute.xlu0 %485 }
 0x1df   :  { %v320_v6 = vpop.f32.mrf.mxu2 }
 0x1e0   :  { %v321_v8 = vadd.f32 %v320_v6, %v280_v4  ;;  %v349_v9 = vpop.f32.mrf.mxu3 }
 0x1e1   :  { %v350_v12 = vadd.f32 %v349_v9, %v280_v4 }
 0x1e2   :  { %750 = vtanh.f32 %v321_v8 }
 0x1e3   :  { %752 = vtanh.f32 %v350_v12 }
 0x1e4   :  { %754 = vtanh.f32 %v318_v7  ;;  %v491_v7 = vpop.permute.xlu1 %490 }
 0x1e5   :  { %756 = vtanh.f32 %v347_v11 }
 0x1e6   :  { %758 = vtanh.f32 %v315_v13  ;;  %v496_v13 = vpop.permute.xlu2 %495 }
 0x1e7   :  { %760 = vtanh.f32 %v344_v15  ;;  %v583_v15 = vpop.permute.xlu0 %582 }
 0x1e8   :  { %v751_v18 = vpop.eup %750  ;;  %762 = vtanh.f32 %v312_v16 }
 0x1e9   :  { %v753_v19 = vpop.eup %752  ;;  %764 = vtanh.f32 %v341_v17  ;;  %414 = vmatpush.msrb.mxu0 %v751_v18 }
 0x1ea   :  { %v755_v20 = vpop.eup %754  ;;  %443 = vmatpush.msrb.mxu1 %v753_v19 }
 0x1eb   :  { %v757_v21 = vpop.eup %756  ;;  %415 = vmatpush.msrb.mxu0 %v755_v20 }
 0x1ec   :  { %v759_v22 = vpop.eup %758  ;;  %444 = vmatpush.msrb.mxu1 %v757_v21 }
 0x1ed   :  { %v761_v23 = vpop.eup %760  ;;  %416 = vmatpush.msrb.mxu0 %v759_v22 }
 0x1ee   :  { %v763_v25 = vpop.eup %762  ;;  %445 = vmatpush.msrb.mxu1 %v761_v23 }
 0x1ef   :  { %v765_v26 = vpop.eup %764  ;;  %417 = vmatpush.msrb.mxu0 %v763_v25 }
 0x1f0   :  { %446 = vmatpush.msrb.mxu1 %v765_v26  ;;  %683 = vmatmul.msk.f32.vlgmr.msrb.gmra.mxu0 %vm173_vm0, %v675_v24 }
 0x1f1   :  { %687 = vmatmul.msk.f32.vlgmr.msrb.gmra.mxu1 %vm173_vm0, %v675_v24  ;;  %v588_v24 = vpop.permute.xlu1 %587 }
 0x1f8   :  { %684 = vmatmul.msk.f32.gmra.mxu0 %vm173_vm0, %v676_v27 }
 0x1f9   :  { %688 = vmatmul.msk.f32.gmra.mxu1 %vm173_vm0, %v676_v27  ;;  %v593_v27 = vpop.permute.xlu2 %592 }
 0x200   :  { %685 = vmatmul.msk.f32.gmra.mxu0 %vm173_vm0, %v677_v28 }
 0x201   :  { %689 = vmatmul.msk.f32.gmra.mxu1 %vm173_vm0, %v677_v28 }
 0x208   :  { %686 = vmatmul.msk.f32.gmra.mxu0 %vm173_vm0, %v678_v29 }
 0x209   :  { %690 = vmatmul.msk.f32.gmra.mxu1 %vm173_vm0, %v678_v29 }
 0x26d   :  { %v419_v30 = vpop.f32.mrf.mxu0 }
 0x26e   :  { %v448_v31 = vpop.f32.mrf.mxu1  ;;  %v420_v48 = vadd.f32 %v419_v30, %v373_v46 }
 0x26f   :  { %v449_v49 = vadd.f32 %v448_v31, %v373_v46 }
 0x275   :  { %v422_v32 = vpop.f32.mrf.mxu0 }
 0x276   :  { %v451_v33 = vpop.f32.mrf.mxu1  ;;  %v423_v45 = vadd.f32 %v422_v32, %v378_v42 }
 0x277   :  { %v452_v47 = vadd.f32 %v451_v33, %v378_v42 }
 0x27d   :  { %v425_v34 = vpop.f32.mrf.mxu0 }
 0x27e   :  { %v454_v35 = vpop.f32.mrf.mxu1  ;;  %v426_v39 = vadd.f32 %v425_v34, %v383_v37 }
 0x27f   :  { %v455_v43 = vadd.f32 %v454_v35, %v383_v37  ;;  %v598_v35 = vpop.permute.xlu0 %597 }
 0x285   :  { %v428_v38 = vpop.f32.mrf.mxu0 }
 0x286   :  { %v429_v40 = vadd.f32 %v428_v38, %v388_v36  ;;  %v457_v41 = vpop.f32.mrf.mxu1 }
 0x287   :  { %v458_v44 = vadd.f32 %v457_v41, %v388_v36 }
 0x288   :  { %766 = vtanh.f32 %v429_v40 }
 0x289   :  { %768 = vtanh.f32 %v458_v44 }
 0x28a   :  { %770 = vtanh.f32 %v426_v39 }
 0x28b   :  { %772 = vtanh.f32 %v455_v43 }
 0x28c   :  { %774 = vtanh.f32 %v423_v45 }
 0x28d   :  { %776 = vtanh.f32 %v452_v47 }
 0x28e   :  { %v767_v50 = vpop.eup %766  ;;  %778 = vtanh.f32 %v420_v48 }
 0x28f   :  { %v769_v51 = vpop.eup %768  ;;  %780 = vtanh.f32 %v449_v49  ;;  %522 = vmatpush.msrb.mxu2 %v767_v50 }
 0x290   :  { %v771_v52 = vpop.eup %770  ;;  %551 = vmatpush.msrb.mxu3 %v769_v51 }
 0x291   :  { %v773_v53 = vpop.eup %772  ;;  %523 = vmatpush.msrb.mxu2 %v771_v52  ;;  %v630_v52 = vpop.permute.xlu1 %629 }
 0x292   :  { %v775_v54 = vpop.eup %774  ;;  %552 = vmatpush.msrb.mxu3 %v773_v53 }
 0x293   :  { %v777_v55 = vpop.eup %776  ;;  %524 = vmatpush.msrb.mxu2 %v775_v54 }
 0x294   :  { %v779_v57 = vpop.eup %778  ;;  %553 = vmatpush.msrb.mxu3 %v777_v55  ;;  %v632_v55 = vperm.slane %v630_v52, 0 }
 0x295   :  { %v781_v58 = vpop.eup %780  ;;  %525 = vmatpush.msrb.mxu2 %v779_v57 }
 0x296   :  { %554 = vmatpush.msrb.mxu3 %v781_v58  ;;  %699 = vmatmul.msk.f32.vlgmr.msrb.gmra.mxu2 %vm173_vm0, %v691_v56  ;;  %v641_v58 = vlaneseq }
 0x297   :  { %703 = vmatmul.msk.f32.vlgmr.msrb.gmra.mxu3 %vm173_vm0, %v691_v56 }
 0x298   :  { %vm643_vm2 = vcmp.lt.s32.totalorder %v641_v58, 256 }
 0x29e   :  { %700 = vmatmul.msk.f32.gmra.mxu2 %vm173_vm0, %v692_v59 }
 0x29f   :  { %704 = vmatmul.msk.f32.gmra.mxu3 %vm173_vm0, %v692_v59 }
 0x2a6   :  { %701 = vmatmul.msk.f32.gmra.mxu2 %vm173_vm0, %v693_v60 }
 0x2a7   :  { %705 = vmatmul.msk.f32.gmra.mxu3 %vm173_vm0, %v693_v60 }
 0x2ae   :  { %702 = vmatmul.msk.f32.gmra.mxu2 %vm173_vm0, %v694_v61 }
 0x2af   :  { %706 = vmatmul.msk.f32.gmra.mxu3 %vm173_vm0, %v694_v61 }
 0x319   :  { %v527_v62 = vpop.f32.mrf.mxu2 }
 0x31a   :  { %v556_v63 = vpop.f32.mrf.mxu3  ;;  %v528_v4 = vadd.f32 %v527_v62, %v481_v1 }
 0x31b   :  { %v557_v5 = vadd.f32 %v556_v63, %v481_v1 }
 0x31c   :  { %782 = vtanh.f32 %v528_v4 }
 0x31d   :  { %784 = vtanh.f32 %v557_v5 }
 0x321   :  { %v530_v0 = vpop.f32.mrf.mxu2 }
 0x322   :  { %v559_v2 = vpop.f32.mrf.mxu3  ;;  %v531_v6 = vadd.f32 %v530_v0, %v486_v3  ;;  %v783_v14 = vpop.eup %782 }
 0x323   :  { %v560_v8 = vadd.f32 %v559_v2, %v486_v3  ;;  %v785_v16 = vpop.eup %784  ;;  %v600_v29 = vmul.f32 %v783_v14, %v583_v15 }
 0x324   :  { %786 = vtanh.f32 %v531_v6  ;;  %v601_v31 = vmul.f32 %v785_v16, %v583_v15 }
 0x325   :  { %788 = vtanh.f32 %v560_v8 }
 0x329   :  { %v533_v9 = vpop.f32.mrf.mxu2 }
 0x32a   :  { %v534_v10 = vadd.f32 %v533_v9, %v491_v7  ;;  %v562_v11 = vpop.f32.mrf.mxu3  ;;  %v787_v18 = vpop.eup %786 }
 0x32b   :  { %v563_v12 = vadd.f32 %v562_v11, %v491_v7  ;;  %v789_v21 = vpop.eup %788  ;;  %v602_v26 = vmul.f32 %v787_v18, %v588_v24 }
 0x32c   :  { %790 = vtanh.f32 %v534_v10  ;;  %v603_v28 = vmul.f32 %v789_v21, %v588_v24 }
 0x32d   :  { %792 = vtanh.f32 %v563_v12  ;;  %v608_v33 = vadd.f32 %v602_v26, %v600_v29 }
 0x32e   :  { %v617_v36 = vadd.f32 %v603_v28, %v601_v31 }
 0x331   :  { %v536_v17 = vpop.f32.mrf.mxu2 }
 0x332   :  { %v537_v19 = vadd.f32 %v536_v17, %v496_v13  ;;  %v565_v20 = vpop.f32.mrf.mxu3  ;;  %v791_v23 = vpop.eup %790 }
 0x333   :  { %v566_v22 = vadd.f32 %v565_v20, %v496_v13  ;;  %v793_v25 = vpop.eup %792  ;;  %v604_v30 = vmul.f32 %v791_v23, %v593_v27 }
 0x334   :  { %794 = vtanh.f32 %v537_v19  ;;  %v605_v32 = vmul.f32 %v793_v25, %v593_v27 }
 0x335   :  { %796 = vtanh.f32 %v566_v22  ;;  %v609_v38 = vadd.f32 %v608_v33, %v604_v30 }
 0x336   :  { %v618_v40 = vadd.f32 %v617_v36, %v605_v32 }
 0x33a   :  { %v795_v34 = vpop.eup %794 }
 0x33b   :  { %v797_v37 = vpop.eup %796  ;;  %v606_v39 = vmul.f32 %v795_v34, %v598_v35 }
 0x33c   :  { %v607_v41 = vmul.f32 %v797_v37, %v598_v35 }
 0x33d   :  { %v610_v42 = vadd.f32 %v609_v38, %v606_v39 }
 0x33e   :  { %v619_v43 = vadd.f32 %v618_v40, %v607_v41 }
 0x33f   :  { %v611_v44 = vrot.slane %v610_v42, 4 }
 0x340   :  { %v620_v45 = vrot.slane %v619_v43, 4 }
 0x341   :  { %v612_v46 = vadd.f32 %v611_v44, %v610_v42 }
 0x342   :  { %v621_v47 = vadd.f32 %v620_v45, %v619_v43 }
 0x343   :  { %v613_v48 = vrot.slane %v612_v46, 2 }
 0x344   :  { %v622_v49 = vrot.slane %v621_v47, 2 }
 0x345   :  { %v614_v50 = vadd.f32 %v613_v48, %v612_v46 }
 0x346   :  { %v623_v51 = vadd.f32 %v622_v49, %v621_v47 }
 0x347   :  { %v615_v53 = vrot.slane %v614_v50, 1 }
 0x348   :  { %v624_v54 = vrot.slane %v623_v51, 1 }
 0x349   :  { %v616_v56 = vadd.f32 %v615_v53, %v614_v50 }
 0x34a   :  { %v625_v57 = vadd.f32 %v624_v54, %v623_v51 }
 0x34b   :  { %v633_v60 = vadd.f32 %v632_v55, %v616_v56 }
 0x34c   :  { %v634_v59 = vadd.f32 %v632_v55, %v625_v57 }
 0x34e   :  { %v637_v61 = vrot.slane %v634_v59, 7 }
 0x350   :  { %v639_v62 = vsel %vm638_vm1, %v633_v60, %v637_v61 }
 0x351   :  { %645 = vst.msk [vmem:[%s1023_s7] sm:$0x3] %vm643_vm2, %v639_v62 }

</bundles_post_ra>
